<compile_context>
chip_gen: v6e
topology: v6e:2x2x1
jax: 0.10.0
libtpu: 0.0.40
codegen_flags: <defaults>
</compile_context>

<pallas_src>
from functools import partial

import jax
import jax.numpy as jnp
from jax.experimental import pallas as pl
from jax.experimental.pallas import tpu as pltpu


def _fast_recip(x):
    # approx vrcp (EUP) + one Newton-Raphson refinement: ~2^-24 relative error,
    # comfortably inside the 1e-6 atol at these O(1) magnitudes.
    y = pl.reciprocal(x, approx=True)
    return y * (jnp.float32(2.0) - x * y)


def _make_mtloss_kernel(task_num):
    """Kernel closure; task_num is a static Python int (spare lane index)."""

    def _kernel(packed_ref, out_ref):
        # packed_ref: (3, P) f32  rows: [loss, eta, scale]; padded lanes are all 0.
        losses = packed_ref[0:1, :]          # (1, P)
        eta = packed_ref[1:2, :]             # (1, P)
        scale = packed_ref[2:3, :]           # (1, P)  1.0 / 0.5 valid, 0.0 padded

        exp_neg_eta = jnp.exp(-eta)          # EUP
        adj_loss = losses * scale            # loss halved where IS_R; 0 on pads

        # total_loss terms and un-normalized weights (both exactly 0 on pads).
        terms = adj_loss * exp_neg_eta + jnp.float32(0.5) * eta   # (1, P)
        w = exp_neg_eta * scale                                   # (1, P)

        # Two independent lane reductions (no concat/relayout on the crit path).
        total = jnp.sum(terms, axis=-1, keepdims=True)            # (1, 1)
        wsum = jnp.sum(w, axis=-1, keepdims=True)                 # (1, 1)

        # Normalize, clamp (valid lanes only so pads stay 0), renormalize.
        w = w * _fast_recip(wsum)
        valid = scale > jnp.float32(0.0)
        w = jnp.where(valid, jnp.maximum(w, jnp.float32(1e-5)), jnp.float32(0.0))
        wsum2 = jnp.sum(w, axis=-1, keepdims=True)                # (1, 1)
        w = w * _fast_recip(wsum2)

        # Fold the scalar total into spare lane `task_num` of the single output
        # row -> one unmasked lane-dense vst / one writeback DMA.
        lane = jax.lax.broadcasted_iota(jnp.int32, w.shape, 1)
        out_ref[...] = jnp.where(lane == task_num, total, w)

    return _kernel


@partial(jax.jit, static_argnames=("scale_static",))
def _mtloss_jit(loss_list, eta, is_r_dyn, scale_static):
    task_num = loss_list.shape[0]
    if scale_static is not None:
        # Static IS_R path: constant-folds into the packed input.
        scale = jnp.asarray(scale_static, jnp.float32)
    else:
        # Runtime bool/int mask path: scale = 1 - 0.5 * mask.
        scale = 1.0 - 0.5 * is_r_dyn.astype(jnp.float32)

    # Lane-dense padding; guarantee one spare lane for the folded scalar total.
    pad = ((task_num + 1 + 127) // 128) * 128

    # Single fused packing op (dynamic_update_slice of a stacked (3, T) block
    # into fresh zeros) instead of 3 scatters + a concatenate.
    packed = (
        jnp.zeros((3, pad), jnp.float32)
        .at[:, :task_num]
        .set(jnp.stack([loss_list, eta, scale], axis=0))
    )

    vmem = pltpu.MemorySpace.VMEM
    out = pl.pallas_call(
        _make_mtloss_kernel(task_num),
        out_shape=jax.ShapeDtypeStruct((1, pad), jnp.float32),
        in_specs=[pl.BlockSpec(memory_space=vmem)],
        out_specs=pl.BlockSpec(memory_space=vmem),
        cost_estimate=pl.CostEstimate(
            flops=10 * pad, transcendentals=pad, bytes_accessed=16 * pad
        ),
    )(packed)

    # Slicing stays inside the jit -> fuses with the consumer (free layout ops).
    total = out[0, task_num]
    weights = out[0, :task_num]
    return total, weights


def mtloss_forward(loss_list, eta, is_r=None):
    """JAX/Pallas equivalent of MTLoss.forward.

    loss_list: (task_num,) f32 per-task scalar losses
    eta:       (task_num,) f32 learnable parameter
    is_r:      None, a static Python list/tuple of bools, or a runtime bool array

    Returns (total_loss_scalar, weight_loss_vector[task_num]).
    """
    loss_list = jnp.asarray(loss_list, jnp.float32)
    eta = jnp.asarray(eta, jnp.float32)
    task_num = loss_list.shape[0]

    if is_r is None:
        scale_static = (1.0,) * task_num
        is_r_dyn = None
    elif isinstance(is_r, (list, tuple)):
        scale_static = tuple(0.5 if bool(b) else 1.0 for b in is_r)
        is_r_dyn = None
    else:
        scale_static = None
        is_r_dyn = jnp.asarray(is_r)

    return _mtloss_jit(loss_list, eta, is_r_dyn, scale_static)


def _reference(loss_list, eta, is_r=None):
    # Pure-JAX reference mirroring the PyTorch module exactly.
    losses = jnp.asarray(loss_list, jnp.float32)
    eta = jnp.asarray(eta, jnp.float32)
    if is_r is not None:
        scale = jnp.where(jnp.asarray(is_r), 0.5, 1.0).astype(jnp.float32)
    else:
        scale = jnp.ones_like(losses)
    losses = losses * scale
    total = jnp.sum(losses * jnp.exp(-eta) + 0.5 * eta)
    w = jnp.exp(-eta) * scale
    w = w / jnp.sum(w)
    w = jnp.where(w < 1e-5, 1e-5, w)
    w = w / jnp.sum(w)
    return total, w


if __name__ == "__main__":
    task_num = 4

    # Deterministic parameter init (MTLoss.__init__ with an explicit weight_loss list).
    weight_loss_init = [1.0, 0.5, 2.0, 1.5]
    eta = jnp.asarray(weight_loss_init, jnp.float32)

    # Deterministic example per-task losses.
    key = jax.random.PRNGKey(0)
    loss_list = jax.random.uniform(key, (task_num,), jnp.float32, 0.1, 3.0)

    # IS_R flags (regression tasks get their loss halved) -- static Python list path.
    is_r_static = [True, False, True, False]
    total, weights = mtloss_forward(loss_list, eta, is_r_static)
    total = jax.block_until_ready(total)
    weights = jax.block_until_ready(weights)
    ref_total, ref_w = _reference(loss_list, eta, jnp.asarray(is_r_static))
    assert jnp.allclose(total, ref_total, rtol=1e-5, atol=1e-6), (total, ref_total)
    assert jnp.allclose(weights, ref_w, rtol=1e-5, atol=1e-6), (weights, ref_w)

    # Runtime bool-array IS_R path.
    is_r_dyn = jnp.asarray([True, False, True, False])
    total_d, weights_d = mtloss_forward(loss_list, eta, is_r_dyn)
    jax.block_until_ready((total_d, weights_d))
    assert jnp.allclose(total_d, ref_total, rtol=1e-5, atol=1e-6)
    assert jnp.allclose(weights_d, ref_w, rtol=1e-5, atol=1e-6)

    # IS_R = None path.
    total2, weights2 = mtloss_forward(loss_list, eta, None)
    jax.block_until_ready((total2, weights2))
    ref_total2, ref_w2 = _reference(loss_list, eta, None)
    assert jnp.allclose(total2, ref_total2, rtol=1e-5, atol=1e-6)
    assert jnp.allclose(weights2, ref_w2, rtol=1e-5, atol=1e-6)

    print("KERNEL_OK")
</pallas_src>

<mosaic_0001>
module attributes {stable_mosaic.version = 11 : i64} {
  func.func @_kernel(%arg0: memref<3x128xf32, #tpu.memory_space<vmem>>, %arg1: memref<1x128xf32, #tpu.memory_space<vmem>>) attributes {dimension_semantics = [], scalar_prefetch = 0 : i64, scratch_operands = 0 : i64, tpu.core_type = #tpu.core_type<tc>} {
    %c0 = arith.constant 0 : index
    %c0_0 = arith.constant 0 : index
    %0 = vector.load %arg0[%c0, %c0_0] : memref<3x128xf32, #tpu.memory_space<vmem>>, vector<1x128xf32>
    %c1 = arith.constant 1 : index
    %c0_1 = arith.constant 0 : index
    %1 = vector.load %arg0[%c1, %c0_1] : memref<3x128xf32, #tpu.memory_space<vmem>>, vector<1x128xf32>
    %c2 = arith.constant 2 : index
    %c0_2 = arith.constant 0 : index
    %2 = vector.load %arg0[%c2, %c0_2] : memref<3x128xf32, #tpu.memory_space<vmem>>, vector<1x128xf32>
    %cst = arith.constant 0.000000e+00 : f32
    %3 = vector.broadcast %cst : f32 to vector<1x128xf32>
    %4 = arith.subf %3, %1 : vector<1x128xf32>
    %5 = math.exp %4 : vector<1x128xf32>
    %6 = arith.mulf %0, %2 : vector<1x128xf32>
    %7 = arith.mulf %6, %5 : vector<1x128xf32>
    %cst_3 = arith.constant 5.000000e-01 : f32
    %8 = vector.broadcast %cst_3 : f32 to vector<1x128xf32>
    %9 = arith.mulf %8, %1 : vector<1x128xf32>
    %10 = arith.addf %7, %9 : vector<1x128xf32>
    %11 = arith.mulf %5, %2 : vector<1x128xf32>
    %cst_4 = arith.constant dense<0.000000e+00> : vector<1xf32>
    %12 = vector.multi_reduction <add>, %10, %cst_4 [1] : vector<1x128xf32> to vector<1xf32>
    %13 = vector.shape_cast %12 : vector<1xf32> to vector<1x1xf32>
    %cst_5 = arith.constant dense<0.000000e+00> : vector<1xf32>
    %14 = vector.multi_reduction <add>, %11, %cst_5 [1] : vector<1x128xf32> to vector<1xf32>
    %15 = vector.shape_cast %14 : vector<1xf32> to vector<1x1xf32>
    %16 = tpu.reciprocal %15 {approx = true} : vector<1x1xf32> -> vector<1x1xf32>
    %17 = arith.mulf %15, %16 : vector<1x1xf32>
    %cst_6 = arith.constant 2.000000e+00 : f32
    %18 = vector.broadcast %cst_6 : f32 to vector<1x1xf32>
    %19 = arith.subf %18, %17 : vector<1x1xf32>
    %20 = arith.mulf %16, %19 : vector<1x1xf32>
    %21 = vector.broadcast %20 : vector<1x1xf32> to vector<1x128xf32>
    %22 = arith.mulf %11, %21 : vector<1x128xf32>
    %cst_7 = arith.constant 0.000000e+00 : f32
    %23 = vector.broadcast %cst_7 : f32 to vector<1x128xf32>
    %24 = arith.cmpf ogt, %2, %23 : vector<1x128xf32>
    %cst_8 = arith.constant 9.99999974E-6 : f32
    %25 = vector.broadcast %cst_8 : f32 to vector<1x128xf32>
    %26 = arith.maximumf %22, %25 : vector<1x128xf32>
    %cst_9 = arith.constant 0.000000e+00 : f32
    %27 = vector.broadcast %cst_9 : f32 to vector<1x128xf32>
    %28 = arith.select %24, %26, %27 : vector<1x128xi1>, vector<1x128xf32>
    %cst_10 = arith.constant dense<0.000000e+00> : vector<1xf32>
    %29 = vector.multi_reduction <add>, %28, %cst_10 [1] : vector<1x128xf32> to vector<1xf32>
    %30 = vector.shape_cast %29 : vector<1xf32> to vector<1x1xf32>
    %31 = tpu.reciprocal %30 {approx = true} : vector<1x1xf32> -> vector<1x1xf32>
    %32 = arith.mulf %30, %31 : vector<1x1xf32>
    %cst_11 = arith.constant 2.000000e+00 : f32
    %33 = vector.broadcast %cst_11 : f32 to vector<1x1xf32>
    %34 = arith.subf %33, %32 : vector<1x1xf32>
    %35 = arith.mulf %31, %34 : vector<1x1xf32>
    %36 = vector.broadcast %35 : vector<1x1xf32> to vector<1x128xf32>
    %37 = arith.mulf %28, %36 : vector<1x128xf32>
    %38 = tpu.iota {dimensions = array<i32: 1>} : vector<1x128xi32>
    %c4_i32 = arith.constant 4 : i32
    %39 = vector.broadcast %c4_i32 : i32 to vector<1x128xi32>
    %40 = arith.cmpi eq, %38, %39 : vector<1x128xi32>
    %41 = vector.shape_cast %13 : vector<1x1xf32> to vector<1x1xf32>
    %42 = vector.broadcast %41 : vector<1x1xf32> to vector<1x128xf32>
    %43 = arith.select %40, %42, %37 : vector<1x128xi1>, vector<1x128xf32>
    %c0_12 = arith.constant 0 : index
    %c0_13 = arith.constant 0 : index
    %44 = vector.load %arg1[%c0_12, %c0_13] : memref<1x128xf32, #tpu.memory_space<vmem>>, vector<1x128xf32>
    tpu.vector_store %arg1[%c0_12, %c0_13], %43 {strides = array<i32>} : memref<1x128xf32, #tpu.memory_space<vmem>>, vector<1x128xf32>,
    return
  }
}

</mosaic_0001>

<bundles_post_ra>
// kernel: _mtloss_jit.1
= control target key start
LH: loop header
LB: loop body
LE: loop exit
PB: predicated region body
PF: predicated region fallthrough
CT: control target
= control target key end

     0   :  { %vm19_vm0 = vcmask 1040384   ;;  %v42_v23 = vlaneseq  ;;  %s82_s0 = inlined_call_operand.vmem [shape: f32[3,128], index: 0, kind: input, shape index: {}]   ;;  %s83_s1 = inlined_call_operand.vmem [shape: f32[1,128], index: 1, kind: output, shape index: {}]  }
   0x1   :  { %v9_v0 = vld [vmem:[%s82_s0 + $0x1] sm:$0x1]  ;;  %v10_v3 = vld [vmem:[%s82_s0 + $0x2] sm:$0x1]  ;;  %v8_v7 = vld [vmem:[%s82_s0] sm:$0x1] }
   0x2   :  { %v11_v1 = vsub.f32 0.0, %v9_v0  ;;  %v14_v8 = vmul.f32 %v10_v3, %v8_v7  ;;  %v16_v9 = vmul.f32 0.5, %v9_v0  ;;  %vm31_vm1 = vcmp.gt.f32.partialorder %v10_v3, 0.0 }
   0x3   :  { %v43_v26 = vand.u32 127, %v42_v23 }
   0x4   :  { %v12_v2 = vmul.f32 1.442695, %v11_v1 }
   0x5   :  { %vm44_vm2 = vcmp.eq.s32.totalorder %v43_v26, 4 }
   0x6   :  { %51 = vpow2.f32 %v12_v2 }
  0x13   :  { %v52_v4 = vpop.eup %51 }
  0x14   :  { %v18_v5 = vmul.f32 %v52_v4, %v10_v3  ;;  %v15_v10 = vmul.f32 %v52_v4, %v14_v8 }
  0x16   :  { %v23_v6 = vsel %vm19_vm0, %v18_v5, 0.0  ;;  %v17_v11 = vadd.f32 %v16_v9, %v15_v10 }
  0x17   :  { %24 = vadd.xlane.f32.xlu0 %v23_v6 }
  0x18   :  { %v20_v12 = vsel %vm19_vm0, %v17_v11, 0.0 }
  0x19   :  { %21 = vadd.xlane.f32.xlu1 %v20_v12 }
  0xa0   :  { %v25_v13 = vpop.xlane.xlu0 %24 }
  0xa1   :  { %53 = vrcp.f32 %v25_v13 }
  0xa2   :  { %v22_v29 = vpop.xlane.xlu1 %21 }
  0xae   :  { %v54_v14 = vpop.eup %53 }
  0xaf   :  { %v27_v15 = vmul.f32 %v54_v14, %v25_v13 }
  0xb1   :  { %v28_v16 = vsub.f32 2.0, %v27_v15 }
  0xb3   :  { %v29_v17 = vmul.f32 %v54_v14, %v28_v16 }
  0xb5   :  { %v30_v18 = vmul.f32 %v29_v17, %v18_v5 }
  0xb7   :  { %v32_v19 = vmax.f32 %v30_v18, 1e-05 }
  0xb9   :  { %v33_v20 = vsel %vm31_vm1, %v32_v19, 0.0 }
  0xba   :  { %v34_v21 = vsel %vm19_vm0, %v33_v20, 0.0 }
  0xbb   :  { %35 = vadd.xlane.f32.xlu0 %v34_v21 }
 0x144   :  { %v36_v22 = vpop.xlane.xlu0 %35 }
 0x145   :  { %55 = vrcp.f32 %v36_v22 }
 0x152   :  { %v56_v24 = vpop.eup %55 }
 0x153   :  { %v38_v25 = vmul.f32 %v56_v24, %v36_v22 }
 0x155   :  { %v39_v27 = vsub.f32 2.0, %v38_v25 }
 0x157   :  { %v40_v28 = vmul.f32 %v56_v24, %v39_v27 }
 0x159   :  { %v41_v30 = vmul.f32 %v40_v28, %v33_v20 }
 0x15b   :  { %v45_v31 = vsel %vm44_vm2, %v22_v29, %v41_v30 }
 0x15c   :  { %46 = vst [vmem:[%s83_s1] sm:$0x1] %v45_v31 }

</bundles_post_ra>
